<compile_context>
chip_gen: v5e
topology: v5e:2x2
jax: 0.10.0
libtpu: 0.0.40
codegen_flags: <defaults>
</compile_context>

<pallas_src>
import functools

import jax
import jax.numpy as jnp
import numpy as np
from jax import lax
from jax.experimental import pallas as pl
from jax.experimental.pallas import tpu as pltpu

LANE = 128
SUBLANE = 8
TARGET_ROWS_PER_BLOCK = 512   # review: 256-512 rows/block (halve for v7x if wide)


def _round_up(x, m):
    return ((x + m - 1) // m) * m


# --------------------------------------------------------------------------- #
# Kernel
# --------------------------------------------------------------------------- #
def char_cnn_ff_kernel(ids_ref, fw_ref, bias_ref, mask_ref, lw_ref, lb_ref,
                       out_ref, *, b_blk, l_pad, v):
    rows = b_blk * l_pad
    kw_max = ids_ref.shape[0]
    nf_pad = fw_ref.shape[1]
    cdtype = fw_ref.dtype            # MXU operand dtype (f32 or bf16)

    # Tap-shifted one-hots, laid out to match the row blocks of fused_w.
    iota_v = lax.broadcasted_iota(jnp.int32, (rows, v), 1)
    parts = [(ids_ref[k] == iota_v).astype(jnp.float32) for k in range(kw_max)]
    oh_cat = jnp.concatenate(parts, axis=1).astype(cdtype)       # (rows, kw*V)

    # Fused embedding-lookup + all-filter conv: ONE MXU matmul, contraction
    # depth kw_max*V, lane-dense nf_pad output.
    p = jnp.dot(oh_cat, fw_ref[...], preferred_element_type=jnp.float32)
    p3 = p.reshape(b_blk, l_pad, nf_pad)                         # 8-aligned split

    # f32 epilogue (v5e has no bf16 VPU/EUP): bias + tanh, additive -1e9 mask
    # on positions invalid for wider filters / padding, shared max-pool.
    # (Additive mask is safe only because tanh is bounded.)
    h = jnp.tanh(p3 + bias_ref[...]) + mask_ref[...]             # (b, L_pad, nf_pad)
    pooled = jnp.max(h, axis=1)                                  # (b, nf_pad)

    # Final linear into a lane-dense 128-padded output.
    out_ref[...] = (jnp.dot(pooled.astype(cdtype), lw_ref[...],
                            preferred_element_type=jnp.float32)
                    + lb_ref[...])


# --------------------------------------------------------------------------- #
# One-time parameter packing (hoisted out of the per-call path; pure numpy)
# --------------------------------------------------------------------------- #
def pack_char_cnn_ff_params(embed_table, conv_ws, conv_bs, lin_w, lin_b,
                            filters, L, mxu_dtype=jnp.bfloat16):
    V, D = embed_table.shape
    sum_nf = sum(nf for _, nf in filters)
    kw_max = max(kw for kw, _ in filters)
    out_size = lin_w.shape[1]
    assert L >= kw_max, "word length must cover the widest filter"

    L_pad = _round_up(L, SUBLANE)          # sublane-aligned positions per word
    nf_pad = _round_up(sum_nf, LANE)       # lane-dense feature width
    out_pad = _round_up(out_size, LANE)    # lane-dense output width

    # Per-tap conv weights packed into (kw_max, D, nf_pad); taps k >= kw_i and
    # lanes >= sum_nf stay zero, which is what makes padded/garbage rows inert.
    w_full = np.zeros((kw_max, D, nf_pad), np.float32)
    b_full = np.zeros((1, nf_pad), np.float32)
    mask = np.zeros((L_pad, nf_pad), np.float32)
    off = 0
    for (kw, nf), w, b in zip(filters, conv_ws, conv_bs):
        w_np = np.asarray(w, np.float32)                    # (kw, nf, D)
        w_full[:kw, :, off:off + nf] = np.transpose(w_np, (0, 2, 1))
        b_full[0, off:off + nf] = np.asarray(b, np.float32).reshape(-1)
        Ti = L - kw + 1                                     # valid positions
        mask[Ti:, off:off + nf] = -1e9
        off += nf

    # Host-fused embedding @ conv (small-V path): E_k = table @ W_k, stacked
    # along the contraction axis -> (kw_max*V, nf_pad).
    table = np.asarray(embed_table, np.float32)             # (V, D)
    fused = np.einsum('vd,kdn->kvn', table, w_full).reshape(kw_max * V, nf_pad)

    lw_pad = np.zeros((nf_pad, out_pad), np.float32)
    lw_pad[:sum_nf, :out_size] = np.asarray(lin_w, np.float32)
    lb_pad = np.zeros((1, out_pad), np.float32)
    lb_pad[0, :out_size] = np.asarray(lin_b, np.float32).reshape(-1)

    return dict(
        fused_w=jnp.asarray(fused, dtype=mxu_dtype),        # MXU dtype
        bias=jnp.asarray(b_full),                           # f32 epilogue
        mask=jnp.asarray(mask),                             # f32 epilogue
        lin_w=jnp.asarray(lw_pad, dtype=mxu_dtype),         # MXU dtype
        lin_b=jnp.asarray(lb_pad),                          # f32 epilogue
        meta=dict(V=V, D=D, kw_max=kw_max, L=L, L_pad=L_pad, nf_pad=nf_pad,
                  out_pad=out_pad, out_size=out_size, sum_nf=sum_nf),
    )


# --------------------------------------------------------------------------- #
# Per-call wrapper
# --------------------------------------------------------------------------- #
def char_cnn_ff(idx, packed):
    m = packed["meta"]
    B, L = idx.shape
    assert L == m["L"], "params were packed for a different word length"
    L_pad, kw_max, V = m["L_pad"], m["kw_max"], m["V"]
    nf_pad, out_pad, out_size = m["nf_pad"], m["out_pad"], m["out_size"]

    # im2col on the ids (cheapest possible tensor to shift; tiny per-call XLA).
    # ids_taps[k, b*L_pad + t] = id of char (t + k) of word b (0 past the word).
    idx = idx.astype(jnp.int32)
    ids_ext = jnp.pad(idx, ((0, 0), (0, L_pad + kw_max - 1 - L)))
    ids_taps = jnp.stack([ids_ext[:, k:k + L_pad] for k in range(kw_max)], axis=0)
    ids_taps = ids_taps.reshape(kw_max, B * L_pad, 1)

    # Word-chunk grid: whole words per block so the per-word max-pool stays
    # inside one block; weights are grid-invariant and stay VMEM-resident.
    words_per_blk = max(1, TARGET_ROWS_PER_BLOCK // L_pad)
    if B <= words_per_blk:
        b_blk = B
    else:
        b_blk = max(SUBLANE, (words_per_blk // SUBLANE) * SUBLANE)
    grid = (pl.cdiv(B, b_blk),)
    rows_blk = b_blk * L_pad

    flops = 2 * (B * L_pad) * (kw_max * V) * nf_pad + 2 * B * nf_pad * out_pad
    bytes_accessed = (int(ids_taps.size) * 4
                      + sum(int(np.prod(packed[k].shape)) * packed[k].dtype.itemsize
                            for k in ("fused_w", "bias", "mask", "lin_w", "lin_b"))
                      + B * out_pad * 4)
    cost = pl.CostEstimate(flops=int(flops),
                           transcendentals=int(B * L_pad * nf_pad),
                           bytes_accessed=int(bytes_accessed))

    kernel = functools.partial(char_cnn_ff_kernel,
                               b_blk=b_blk, l_pad=L_pad, v=V)

    out = pl.pallas_call(
        kernel,
        out_shape=jax.ShapeDtypeStruct((B, out_pad), jnp.float32),
        grid=grid,
        in_specs=[
            pl.BlockSpec((kw_max, rows_blk, 1), lambda i: (0, i, 0)),   # ids (tiled)
            pl.BlockSpec((kw_max * V, nf_pad), lambda i: (0, 0)),       # fused E_k
            pl.BlockSpec((1, nf_pad), lambda i: (0, 0)),                # bias
            pl.BlockSpec((L_pad, nf_pad), lambda i: (0, 0)),            # -1e9 mask
            pl.BlockSpec((nf_pad, out_pad), lambda i: (0, 0)),          # linear W
            pl.BlockSpec((1, out_pad), lambda i: (0, 0)),               # linear b
        ],
        out_specs=pl.BlockSpec((b_blk, out_pad), lambda i: (i, 0)),
        compiler_params=pltpu.CompilerParams(
            dimension_semantics=("parallel",),
            vmem_limit_bytes=32 * 1024 * 1024),
        cost_estimate=cost,
    )(ids_taps, packed["fused_w"], packed["bias"], packed["mask"],
      packed["lin_w"], packed["lin_b"])
    return out[:, :out_size]


# --------------------------------------------------------------------------- #
# Pure-JAX reference (mirrors the PyTorch module)
# --------------------------------------------------------------------------- #
def reference(idx, embed_table, conv_ws, conv_bs, lin_w, lin_b, filters):
    emb = embed_table[idx]                                      # (B, L, D)
    B, L, _ = emb.shape
    pooled = []
    for (kw, nf), w, b in zip(filters, conv_ws, conv_bs):
        T = L - kw + 1
        acc = jnp.zeros((B, T, nf), jnp.float32)
        for k in range(kw):
            acc = acc + jnp.einsum('btd,fd->btf', emb[:, k:k + T, :], w[k])
        acc = jnp.tanh(acc + b)
        pooled.append(jnp.max(acc, axis=1))
    feats = jnp.concatenate(pooled, axis=1)
    return feats @ lin_w + lin_b


if __name__ == "__main__":
    # module config (small, consistent with CharCNNFF.__init__)
    embedding_num = 32          # vocab size V
    embedding_dim = 16          # D
    filters = [(2, 8), (3, 8)]  # (kernel_width, num_filters)
    conv_output_size = sum(nf for _, nf in filters)   # 16
    output_size = 24
    padding_idx = 0

    B, L = 2, 8                 # batch (words), word length (chars)

    key = jax.random.PRNGKey(0)
    k_idx, k_emb, k_lw, k_lb, *k_convs = jax.random.split(key, 5 + 2 * len(filters))

    idx = jax.random.randint(k_idx, (B, L), 0, embedding_num).astype(jnp.int32)

    embed_table = 0.1 * jax.random.normal(k_emb, (embedding_num, embedding_dim),
                                          jnp.float32)
    embed_table = embed_table.at[padding_idx].set(0.0)   # padding_idx row = 0

    conv_ws, conv_bs = [], []
    for i, (kw, nf) in enumerate(filters):
        kw_key, kb_key = k_convs[2 * i], k_convs[2 * i + 1]
        conv_ws.append(0.1 * jax.random.normal(kw_key, (kw, nf, embedding_dim),
                                               jnp.float32))
        conv_bs.append(0.1 * jax.random.normal(kb_key, (1, nf), jnp.float32))

    lin_w = 0.1 * jax.random.normal(k_lw, (conv_output_size, output_size),
                                    jnp.float32)
    lin_b = 0.1 * jax.random.normal(k_lb, (1, output_size), jnp.float32)

    ref = reference(idx, embed_table, conv_ws, conv_bs, lin_w, lin_b, filters)

    # f32-MXU path: checked against the f32 reference at the original 1e-4.
    packed_f32 = pack_char_cnn_ff_params(embed_table, conv_ws, conv_bs, lin_w,
                                         lin_b, filters, L,
                                         mxu_dtype=jnp.float32)
    out_f32 = jax.block_until_ready(char_cnn_ff(idx, packed_f32))
    np.testing.assert_allclose(np.asarray(out_f32), np.asarray(ref),
                               rtol=1e-4, atol=1e-4)

    # bf16-MXU path (native MXU dtype on v5e/v6e/v7x, per the perf review);
    # validated at a relaxed tolerance per the review's numerical caveat.
    packed_bf16 = pack_char_cnn_ff_params(embed_table, conv_ws, conv_bs, lin_w,
                                          lin_b, filters, L,
                                          mxu_dtype=jnp.bfloat16)
    out_bf16 = jax.block_until_ready(char_cnn_ff(idx, packed_bf16))
    np.testing.assert_allclose(np.asarray(out_bf16), np.asarray(ref),
                               rtol=5e-2, atol=5e-3)

    print("KERNEL_OK")
</pallas_src>

<mosaic_0001>
module attributes {stable_mosaic.version = 11 : i64} {
  func.func @char_cnn_ff_kernel(%arg0: i32, %arg1: memref<3x16x1xi32, #tpu.memory_space<vmem>>, %arg2: memref<96x128xf32, #tpu.memory_space<vmem>>, %arg3: memref<1x128xf32, #tpu.memory_space<vmem>>, %arg4: memref<8x128xf32, #tpu.memory_space<vmem>>, %arg5: memref<128x128xf32, #tpu.memory_space<vmem>>, %arg6: memref<1x128xf32, #tpu.memory_space<vmem>>, %arg7: memref<2x128xf32, #tpu.memory_space<vmem>>) attributes {dimension_semantics = [#tpu.dimension_semantics<parallel>], iteration_bounds = array<i64: 1>, scalar_prefetch = 0 : i64, scratch_operands = 0 : i64, tpu.core_type = #tpu.core_type<tc>, window_params = [{transform_indices = @transform_0, window_bounds = array<i64: 3, 16, 1>}, {pipeline_mode = #tpu.pipeline_mode<synchronous>, transform_indices = @transform_1, window_bounds = array<i64: 96, 128>}, {pipeline_mode = #tpu.pipeline_mode<synchronous>, transform_indices = @transform_2, window_bounds = array<i64: 1, 128>}, {pipeline_mode = #tpu.pipeline_mode<synchronous>, transform_indices = @transform_3, window_bounds = array<i64: 8, 128>}, {pipeline_mode = #tpu.pipeline_mode<synchronous>, transform_indices = @transform_4, window_bounds = array<i64: 128, 128>}, {pipeline_mode = #tpu.pipeline_mode<synchronous>, transform_indices = @transform_5, window_bounds = array<i64: 1, 128>}, {transform_indices = @transform_6, window_bounds = array<i64: 2, 128>}]} {
    %0 = tpu.iota {dimensions = array<i32: 1>} : vector<16x32xi32>
    %c0 = arith.constant 0 : index
    %c0_0 = arith.constant 0 : index
    %c0_1 = arith.constant 0 : index
    %1 = vector.load %arg1[%c0, %c0_0, %c0_1] : memref<3x16x1xi32, #tpu.memory_space<vmem>>, vector<1x16x1xi32>
    %2 = vector.shape_cast %1 : vector<1x16x1xi32> to vector<16x1xi32>
    %3 = vector.broadcast %2 : vector<16x1xi32> to vector<16x32xi32>
    %4 = arith.cmpi eq, %3, %0 : vector<16x32xi32>
    %5 = arith.extui %4 : vector<16x32xi1> to vector<16x32xi32>
    %6 = arith.sitofp %5 : vector<16x32xi32> to vector<16x32xf32>
    %c1 = arith.constant 1 : index
    %c0_2 = arith.constant 0 : index
    %c0_3 = arith.constant 0 : index
    %7 = vector.load %arg1[%c1, %c0_2, %c0_3] : memref<3x16x1xi32, #tpu.memory_space<vmem>>, vector<1x16x1xi32>
    %8 = vector.shape_cast %7 : vector<1x16x1xi32> to vector<16x1xi32>
    %9 = vector.broadcast %8 : vector<16x1xi32> to vector<16x32xi32>
    %10 = arith.cmpi eq, %9, %0 : vector<16x32xi32>
    %11 = arith.extui %10 : vector<16x32xi1> to vector<16x32xi32>
    %12 = arith.sitofp %11 : vector<16x32xi32> to vector<16x32xf32>
    %c2 = arith.constant 2 : index
    %c0_4 = arith.constant 0 : index
    %c0_5 = arith.constant 0 : index
    %13 = vector.load %arg1[%c2, %c0_4, %c0_5] : memref<3x16x1xi32, #tpu.memory_space<vmem>>, vector<1x16x1xi32>
    %14 = vector.shape_cast %13 : vector<1x16x1xi32> to vector<16x1xi32>
    %15 = vector.broadcast %14 : vector<16x1xi32> to vector<16x32xi32>
    %16 = arith.cmpi eq, %15, %0 : vector<16x32xi32>
    %17 = arith.extui %16 : vector<16x32xi1> to vector<16x32xi32>
    %18 = arith.sitofp %17 : vector<16x32xi32> to vector<16x32xf32>
    %19 = tpu.concatenate %6, %12, %18 in 1 : vector<16x32xf32>, vector<16x32xf32>, vector<16x32xf32> -> vector<16x96xf32>
    %c0_6 = arith.constant 0 : index
    %c0_7 = arith.constant 0 : index
    %20 = vector.load %arg2[%c0_6, %c0_7] : memref<96x128xf32, #tpu.memory_space<vmem>>, vector<96x128xf32>
    %cst = arith.constant dense<0.000000e+00> : vector<16x128xf32>
    %21 = tpu.matmul %19, %20, %cst {dimension_numbers = #tpu.dot_dimension_numbers<[1], [0], [0], [1], [0, 0, 1, 1], [], []>} : vector<16x96xf32>, vector<96x128xf32>, vector<16x128xf32> -> vector<16x128xf32>
    %22 = vector.shape_cast %21 : vector<16x128xf32> to vector<2x8x128xf32>
    %c0_8 = arith.constant 0 : index
    %c0_9 = arith.constant 0 : index
    %23 = vector.load %arg3[%c0_8, %c0_9] : memref<1x128xf32, #tpu.memory_space<vmem>>, vector<1x128xf32>
    %24 = vector.shape_cast %23 : vector<1x128xf32> to vector<1x1x128xf32>
    %25 = vector.broadcast %24 : vector<1x1x128xf32> to vector<2x8x128xf32>
    %26 = arith.addf %22, %25 : vector<2x8x128xf32>
    %27 = math.tanh %26 : vector<2x8x128xf32>
    %c0_10 = arith.constant 0 : index
    %c0_11 = arith.constant 0 : index
    %28 = vector.load %arg4[%c0_10, %c0_11] : memref<8x128xf32, #tpu.memory_space<vmem>>, vector<8x128xf32>
    %29 = vector.shape_cast %28 : vector<8x128xf32> to vector<1x8x128xf32>
    %30 = vector.broadcast %29 : vector<1x8x128xf32> to vector<2x8x128xf32>
    %31 = arith.addf %27, %30 : vector<2x8x128xf32>
    %cst_12 = arith.constant dense<0xFF800000> : vector<2x128xf32>
    %32 = vector.multi_reduction <maximumf>, %31, %cst_12 [1] : vector<2x8x128xf32> to vector<2x128xf32>
    %c0_13 = arith.constant 0 : index
    %c0_14 = arith.constant 0 : index
    %33 = vector.load %arg5[%c0_13, %c0_14] : memref<128x128xf32, #tpu.memory_space<vmem>>, vector<128x128xf32>
    %cst_15 = arith.constant dense<0.000000e+00> : vector<2x128xf32>
    %34 = tpu.matmul %32, %33, %cst_15 {dimension_numbers = #tpu.dot_dimension_numbers<[1], [0], [0], [1], [0, 0, 1, 1], [], []>} : vector<2x128xf32>, vector<128x128xf32>, vector<2x128xf32> -> vector<2x128xf32>
    %c0_16 = arith.constant 0 : index
    %c0_17 = arith.constant 0 : index
    %35 = vector.load %arg6[%c0_16, %c0_17] : memref<1x128xf32, #tpu.memory_space<vmem>>, vector<1x128xf32>
    %36 = vector.broadcast %35 : vector<1x128xf32> to vector<2x128xf32>
    %37 = arith.addf %34, %36 : vector<2x128xf32>
    %c0_18 = arith.constant 0 : index
    %c0_19 = arith.constant 0 : index
    %38 = vector.load %arg7[%c0_18, %c0_19] : memref<2x128xf32, #tpu.memory_space<vmem>>, vector<2x128xf32>
    tpu.vector_store %arg7[%c0_18, %c0_19], %37 {strides = array<i32>} : memref<2x128xf32, #tpu.memory_space<vmem>>, vector<2x128xf32>,
    return
  }
  func.func @transform_0(%arg0: i32) -> (i32, i32, i32) {
    %c0_i32 = arith.constant 0 : i32
    %c0_i32_0 = arith.constant 0 : i32
    %c0_i32_1 = arith.constant 0 : i32
    return %c0_i32, %arg0, %c0_i32_0 : i32, i32, i32
  }
  func.func @transform_1(%arg0: i32) -> (i32, i32) {
    %c0_i32 = arith.constant 0 : i32
    %c0_i32_0 = arith.constant 0 : i32
    %c0_i32_1 = arith.constant 0 : i32
    return %c0_i32, %c0_i32_0 : i32, i32
  }
  func.func @transform_2(%arg0: i32) -> (i32, i32) {
    %c0_i32 = arith.constant 0 : i32
    %c0_i32_0 = arith.constant 0 : i32
    %c0_i32_1 = arith.constant 0 : i32
    return %c0_i32, %c0_i32_0 : i32, i32
  }
  func.func @transform_3(%arg0: i32) -> (i32, i32) {
    %c0_i32 = arith.constant 0 : i32
    %c0_i32_0 = arith.constant 0 : i32
    %c0_i32_1 = arith.constant 0 : i32
    return %c0_i32, %c0_i32_0 : i32, i32
  }
  func.func @transform_4(%arg0: i32) -> (i32, i32) {
    %c0_i32 = arith.constant 0 : i32
    %c0_i32_0 = arith.constant 0 : i32
    %c0_i32_1 = arith.constant 0 : i32
    return %c0_i32, %c0_i32_0 : i32, i32
  }
  func.func @transform_5(%arg0: i32) -> (i32, i32) {
    %c0_i32 = arith.constant 0 : i32
    %c0_i32_0 = arith.constant 0 : i32
    %c0_i32_1 = arith.constant 0 : i32
    return %c0_i32, %c0_i32_0 : i32, i32
  }
  func.func @transform_6(%arg0: i32) -> (i32, i32) {
    %c0_i32 = arith.constant 0 : i32
    %c0_i32_0 = arith.constant 0 : i32
    return %arg0, %c0_i32 : i32, i32
  }
}

</mosaic_0001>

<bundles_post_ra>
// kernel: tpu_custom_call.1
= control target key start
LH: loop header
LB: loop body
LE: loop exit
PB: predicated region body
PF: predicated region fallthrough
CT: control target
= control target key end

     0   :  { %11 = vsyncpa [#allocation3], 0  ;;  %s456_s0 = inlined_call_operand.vmem [shape: s32[3,16,1], index: 0, kind: input, shape index: {}]   ;;  %s457_s1 = inlined_call_operand.hbm [shape: f32[96,128], index: 1, kind: input, shape index: {}]   ;;  %s458_s2 = inlined_call_operand.vmem [shape: f32[1,128], index: 2, kind: input, shape index: {}]   ;;  %s459_s3 = inlined_call_operand.vmem [shape: f32[8,128], index: 3, kind: input, shape index: {}]   ;;  %s460_s4 = inlined_call_operand.hbm [shape: f32[128,128], index: 4, kind: input, shape index: {}]   ;;  %s461_s5 = inlined_call_operand.vmem [shape: f32[1,128], index: 5, kind: input, shape index: {}]   ;;  %s462_s6 = inlined_call_operand.hbm [shape: f32[2,128], index: 6, kind: output, shape index: {}]  }
   0x1   :  { %12 = vsyncpa [#allocation6], 0 }
   0x2   :  { %13 = vsyncpa [#allocation4], 0  ;;  %s20_s23 = sshll.u32 %s457_s1, 4  ;;  %s373_s24 = smov [#allocation2]   ;;  %s21_s23 = int_to_ptr.hbm [resolvable:$true] %s20_s23 }
   0x3   :  { %s22_s25 = sshll.u32 %s373_s24, 4  ;;  %s37_s28 = sshll.u32 %s460_s4, 4  ;;  %s23_s25 = int_to_ptr.vmem [resolvable:$true] %s22_s25  ;;  %s38_s28 = int_to_ptr.hbm [resolvable:$true] %s37_s28 }
   0x4   :  { %s374_s29 = smov 128   ;;  %s375_s30 = smov 8  }
   0x5   :  { %28 = dma.hbm_to_vmem [thread:$0]  %s21_s23, 1536, %s23_s25, [#allocation3], %s374_s29, %s374_s29, %s375_s30  }
   0x6   :  { %s376_s7 = smov [#allocation5]  }
   0x7   :  { %s39_s8 = sshll.u32 %s376_s7, 4  ;;  %s40_s8 = int_to_ptr.vmem [resolvable:$true] %s39_s8 }
   0x8   :  { %45 = dma.hbm_to_vmem [thread:$0]  %s38_s28, 2048, %s40_s8, [#allocation6], %s374_s29, %s374_s29, %s375_s30  }
   0x9   :  { %367 = dma.done.wait [#allocation3], 1536  }
   0xa   :  { %368 = vsyncadd [#allocation3], 4294965760 }
   0xb   :  { %369 = dma.done.wait [#allocation6], 2048  }
   0xc   :  { %370 = vsyncadd [#allocation6], 4294965248  ;;  %v377_v0 = vmov 0   ;;  %v256_v1 = vld [vmem:[%s456_s0 + $0x18] sm:$0xff]  ;;  %v255_v2 = vld [vmem:[%s456_s0 + $0x10] sm:$0xff]  ;;  %v56_v7 = vlaneseq  ;;  %v378_v10 = vmov 0.0  }
   0xd   :  { %287 = vset.pattern.permute.xlu1 %v377_v0  ;;  %286 = vset.pattern.permute.xlu0 %v377_v0  ;;  %v59_v3 = vld [vmem:[%s456_s0 + $0x8] sm:$0xff]  ;;  %v259_v5 = vld [vmem:[%s456_s0 + $0x20] sm:$0xff]  ;;  %s379_s19 = smov 32   ;;  %v135_v22 = vld [vmem:[#allocation2 + $0x58] sm:$0xff]  ;;  %vm118_vm6 = vcmask 261120   ;;  %vm121_vm7 = vcmask 523264  }
   0xe   :  { %288 = vset.pattern.permute.xlu2 %v377_v0  ;;  %79 = vperm.xlu0 %286, %v256_v1   ;;  %v260_v4 = vld [vmem:[%s456_s0 + $0x28] sm:$0xff]  ;;  %v58_v6 = vld [vmem:[%s456_s0] sm:$0xff]  ;;  %v57_v8 = vand.u32 127, %v56_v7  ;;  %s380_s0 = smov 64   ;;  %v134_v23 = vld [vmem:[#allocation2 + $0x50] sm:$0xff]  ;;  %vm136_vm8 = vcmask 785408  }
   0xf   :  { %76 = vperm.xlu1 %287, %v255_v2   ;;  %64 = vperm.xlu2 %288, %v59_v3   ;;  %v133_v24 = vld [vmem:[#allocation2 + $0x48] sm:$0xff]  ;;  %v132_v25 = vld [vmem:[#allocation2 + $0x40] sm:$0xff]  ;;  %v131_v26 = vld [vmem:[#allocation2 + $0x38] sm:$0xff]  ;;  %vm211_vm9 = vcmask 1041409   ;;  %s381_s24 = smov [#allocation7]   ;;  %s242_s28 = sshll.u32 %s462_s6, 4  ;;  %s243_s28 = int_to_ptr.hbm [resolvable:$true] %s242_s28 }
  0x10   :  { %265 = vmatpush.msra.mxu2 %v135_v22  ;;  %147 = vmatpush.msra.mxu0 %v135_v22  ;;  %v130_v27 = vld [vmem:[#allocation2 + $0x30] sm:$0xff]  ;;  %v129_v28 = vld [vmem:[#allocation2 + $0x28] sm:$0xff]  ;;  %v128_v29 = vld [vmem:[#allocation2 + $0x20] sm:$0xff]  ;;  %s240_s25 = sshll.u32 %s381_s24, 4  ;;  %s241_s25 = int_to_ptr.vmem [resolvable:$true] %s240_s25 }
  0x11   :  { %v127_v30 = vld [vmem:[#allocation2 + $0x18] sm:$0xff]  ;;  %v126_v31 = vld [vmem:[#allocation2 + $0x10] sm:$0xff]  ;;  %v125_v32 = vld [vmem:[#allocation2 + $0x8] sm:$0xff] }
  0x12   :  { %266 = vmatpush.msra.mxu2 %v134_v23  ;;  %148 = vmatpush.msra.mxu0 %v134_v23  ;;  %v124_v33 = vld [vmem:[#allocation2] sm:$0xff]  ;;  %v204_v34 = vld [vmem:[#allocation5 + $0x78] sm:$0xff]  ;;  %v203_v35 = vld [vmem:[#allocation5 + $0x70] sm:$0xff] }
  0x13   :  { %214 = vmatpush.msra.mxu1 %v204_v34  ;;  %v202_v44 = vld [vmem:[#allocation5 + $0x68] sm:$0xff]  ;;  %v201_v45 = vld [vmem:[#allocation5 + $0x60] sm:$0xff]  ;;  %v200_v46 = vld [vmem:[#allocation5 + $0x58] sm:$0xff] }
  0x14   :  { %267 = vmatpush.msra.mxu2 %v133_v24  ;;  %149 = vmatpush.msra.mxu0 %v133_v24  ;;  %v199_v47 = vld [vmem:[#allocation5 + $0x50] sm:$0xff]  ;;  %v198_v48 = vld [vmem:[#allocation5 + $0x48] sm:$0xff]  ;;  %v197_v49 = vld [vmem:[#allocation5 + $0x40] sm:$0xff] }
  0x15   :  { %215 = vmatpush.msra.mxu1 %v203_v35  ;;  %v196_v50 = vld [vmem:[#allocation5 + $0x38] sm:$0xff]  ;;  %v195_v51 = vld [vmem:[#allocation5 + $0x30] sm:$0xff]  ;;  %v194_v52 = vld [vmem:[#allocation5 + $0x28] sm:$0xff] }
  0x16   :  { %94 = vperm.xlu0 %286, %v260_v4   ;;  %268 = vmatpush.msra.mxu2 %v132_v25  ;;  %v193_v53 = vld [vmem:[#allocation5 + $0x20] sm:$0xff]  ;;  %v192_v54 = vld [vmem:[#allocation5 + $0x18] sm:$0xff]  ;;  %v191_v55 = vld [vmem:[#allocation5 + $0x10] sm:$0xff] }
  0x17   :  { %91 = vperm.xlu1 %287, %v259_v5   ;;  %150 = vmatpush.msra.mxu0 %v132_v25  ;;  %v190_v56 = vld [vmem:[#allocation5 + $0x8] sm:$0xff]  ;;  %v189_v57 = vld [vmem:[#allocation5] sm:$0xff] }
  0x18   :  { %269 = vmatpush.msra.mxu2 %v131_v26  ;;  %216 = vmatpush.msra.mxu1 %v202_v44  ;;  %v289_v58 = vld [vmem:[%s458_s2] ss:$0 sm:$0xff] }
  0x19   :  { %151 = vmatpush.msra.mxu0 %v131_v26  ;;  %v174_v63 = vld [vmem:[%s459_s3] sm:$0xff] }
  0x1a   :  { %270 = vmatpush.msra.mxu2 %v130_v27  ;;  %217 = vmatpush.msra.mxu1 %v201_v45 }
  0x1b   :  { %152 = vmatpush.msra.mxu0 %v130_v27 }
  0x1c   :  { %271 = vmatpush.msra.mxu2 %v129_v28  ;;  %218 = vmatpush.msra.mxu1 %v200_v46 }
  0x1d   :  { %153 = vmatpush.msra.mxu0 %v129_v28 }
  0x1e   :  { %272 = vmatpush.msra.mxu2 %v128_v29  ;;  %219 = vmatpush.msra.mxu1 %v199_v47 }
  0x1f   :  { %61 = vperm.xlu1 %287, %v58_v6   ;;  %154 = vmatpush.msra.mxu0 %v128_v29 }
  0x20   :  { %273 = vmatpush.msra.mxu2 %v127_v30  ;;  %220 = vmatpush.msra.mxu1 %v198_v48 }
  0x21   :  { %155 = vmatpush.msra.mxu0 %v127_v30 }
  0x22   :  { %274 = vmatpush.msra.mxu2 %v126_v31  ;;  %221 = vmatpush.msra.mxu1 %v197_v49 }
  0x23   :  { %156 = vmatpush.msra.mxu0 %v126_v31 }
  0x24   :  { %275 = vmatpush.msra.mxu2 %v125_v32  ;;  %222 = vmatpush.msra.mxu1 %v196_v50 }
  0x25   :  { %157 = vmatpush.msra.mxu0 %v125_v32 }
  0x26   :  { %276 = vmatpush.msra.mxu2 %v124_v33  ;;  %223 = vmatpush.msra.mxu1 %v195_v51 }
  0x27   :  { %158 = vmatpush.msra.mxu0 %v124_v33 }
  0x28   :  { %224 = vmatpush.msra.mxu1 %v194_v52 }
  0x2a   :  { %225 = vmatpush.msra.mxu1 %v193_v53 }
  0x2c   :  { %226 = vmatpush.msra.mxu1 %v192_v54 }
  0x2e   :  { %227 = vmatpush.msra.mxu1 %v191_v55 }
  0x30   :  { %228 = vmatpush.msra.mxu1 %v190_v56 }
  0x32   :  { %229 = vmatpush.msra.mxu1 %v189_v57 }
  0x69   :  { %v65_v9 = vpop.permute.xlu2 %64 }
  0x6a   :  { %vm67_vm0 = vcmp.eq.s32.totalorder %v65_v9, %v57_v8 }
  0x6b   :  { %v441_v11 = vsel %vm67_vm0, 1.0, %v378_v10 }
  0x80   :  { %v80_v12 = vpop.permute.xlu0 %79 }
  0x81   :  { %v77_v13 = vpop.permute.xlu1 %76  ;;  %vm82_vm1 = vcmp.eq.s32.totalorder %v80_v12, %v57_v8 }
  0x82   :  { %v258_v14 = vsel %vm82_vm1, 1.0, %v378_v10  ;;  %vm81_vm2 = vcmp.eq.s32.totalorder %v77_v13, %v57_v8 }
  0x83   :  { %106 = vrot.lane.b32.xlu2 %v258_v14, %s379_s19  ;;  %v257_v15 = vsel %vm81_vm2, 1.0, %v378_v10 }
  0x88   :  { %v95_v16 = vpop.permute.xlu0 %94 }
  0x89   :  { %v92_v17 = vpop.permute.xlu1 %91  ;;  %vm97_vm3 = vcmp.eq.s32.totalorder %v95_v16, %v57_v8 }
  0x8a   :  { %v262_v18 = vsel %vm97_vm3, 1.0, %v378_v10  ;;  %vm96_vm4 = vcmp.eq.s32.totalorder %v92_v17, %v57_v8  ;;  %v290_v17 = vld [vmem:[%s461_s5] ss:$0 sm:$0xff] }
  0x8b   :  { %114 = vrot.lane.b32.xlu0 %v262_v18, %s380_s0  ;;  %104 = vrot.lane.b32.xlu2 %v257_v15, %s379_s19  ;;  %v261_v20 = vsel %vm96_vm4, 1.0, %v378_v10 }
  0x91   :  { %v62_v19 = vpop.permute.xlu1 %61 }
  0x92   :  { %vm66_vm5 = vcmp.eq.s32.totalorder %v62_v19, %v57_v8 }
  0x93   :  { %v253_v21 = vsel %vm66_vm5, 1.0, %v378_v10  ;;  %112 = vrot.lane.b32.xlu0 %v261_v20, %s380_s0 }
  0xdd   :  { %v107_v36 = vpop.permute.xlu2 %106 }
  0xde   :  { %v120_v37 = vsel %vm118_vm6, %v441_v11, %v107_v36 }
  0xe5   :  { %v105_v40 = vpop.permute.xlu2 %104 }
  0xe6   :  { %v119_v41 = vsel %vm118_vm6, %v253_v21, %v105_v40 }
  0xfd   :  { %v115_v38 = vpop.permute.xlu0 %114 }
  0xfe   :  { %v123_v39 = vsel %vm121_vm7, %v120_v37, %v115_v38 }
  0xff   :  { %264 = vmatmul.msk.f32.vlgmr.msra.gmra.mxu2 %vm136_vm8, %v123_v39 }
 0x105   :  { %v113_v42 = vpop.permute.xlu0 %112 }
 0x106   :  { %v122_v43 = vsel %vm121_vm7, %v119_v41, %v113_v42 }
 0x107   :  { %263 = vmatmul.msk.f32.vlgmr.msra.gmra.mxu0 %vm136_vm8, %v122_v43 }
 0x182   :  { %v163_v59 = vpop.f32.mrf.mxu2 }
 0x183   :  { %v171_v60 = vadd.f32 %v289_v58, %v163_v59 }
 0x184   :  { %v160_v61 = vpop.f32.mrf.mxu0 }
 0x185   :  { %291 = vtanh.f32 %v171_v60  ;;  %v170_v62 = vadd.f32 %v289_v58, %v160_v61 }
 0x187   :  { %293 = vtanh.f32 %v170_v62 }
 0x18b   :  { %v292_v0 = vpop.eup %291 }
 0x18c   :  { %v176_v1 = vadd.f32 %v292_v0, %v174_v63 }
 0x18d   :  { %v294_v2 = vpop.eup %293 }
 0x18e   :  { %v183_v3 = vrot.slane %v176_v1, 4  ;;  %v175_v4 = vadd.f32 %v294_v2, %v174_v63 }
 0x190   :  { %v177_v5 = vrot.slane %v175_v4, 4  ;;  %v184_v6 = vmax.f32 %v176_v1, %v183_v3 }
 0x192   :  { %v178_v7 = vmax.f32 %v175_v4, %v177_v5  ;;  %v185_v8 = vrot.slane %v184_v6, 2 }
 0x194   :  { %v179_v9 = vrot.slane %v178_v7, 2  ;;  %v186_v10 = vmax.f32 %v184_v6, %v185_v8 }
 0x196   :  { %v180_v11 = vmax.f32 %v178_v7, %v179_v9  ;;  %v187_v12 = vrot.slane %v186_v10, 1 }
 0x198   :  { %v181_v13 = vrot.slane %v180_v11, 1  ;;  %v188_v15 = vmax.f32 %v186_v10, %v187_v12 }
 0x19a   :  { %v182_v14 = vmax.f32 %v180_v11, %v181_v13 }
 0x19c   :  { %v212_v16 = vsel %vm211_vm9, %v188_v15, %v182_v14 }
 0x19d   :  { %230 = vmatmul.f32.vlgmr.msra.gmra.mxu1 %v212_v16 }
 0x21a   :  { %v231_v18 = vpop.f32.mrf.mxu1 }
 0x21b   :  { %v232_v19 = vadd.f32 %v290_v17, %v231_v18 }
 0x21d   :  { %234 = vst [vmem:[#allocation7] sm:$0x3] %v232_v19 }
 0x21e   :  { %245 = dma.vmem_to_hbm [thread:$0]  %s241_s25, 32, %s243_s28, [#allocation4]  }
 0x21f   :  { %371 = dma.done.wait [#allocation4], 32  }
 0x220   :  { %372 = vsyncadd [#allocation4], 4294967264 }
 0x221   :  { %250 = vsyncpa [#allocation3], 1 }
 0x222   :  { %251 = vsyncpa [#allocation6], 1 }
 0x223   :  { %252 = vsyncpa [#allocation4], 1 }

</bundles_post_ra>
